<compile_context>
chip_gen: v7x
topology: tpu7x:2x2x1
jax: 0.10.0
libtpu: 0.0.40
codegen_flags: <defaults>
</compile_context>

<pallas_src>
import jax
import jax.numpy as jnp
from jax import lax
from jax.experimental import pallas as pl
from jax.experimental.pallas import tpu as pltpu

N = 64        # number of samples, matching torch.randn(64)
LANES = 128   # lane-dense output width (one vreg row)


def _mix(x):
    """murmur3 fmix32 finalizer on uint32 (pure VPU int ops)."""
    x = x ^ (x >> jnp.uint32(16))
    x = x * jnp.uint32(0x85EBCA6B)
    x = x ^ (x >> jnp.uint32(13))
    x = x * jnp.uint32(0xC2B2AE35)
    x = x ^ (x >> jnp.uint32(16))
    return x


def _erfinv(x):
    """Giles (2010) single-precision erfinv approximation, |x| < 1 strictly."""
    w = -jnp.log((1.0 - x) * (1.0 + x))

    # central branch (w < 5)
    wc = w - 2.5
    p1 = jnp.float32(2.81022636e-08)
    p1 = jnp.float32(3.43273939e-07) + p1 * wc
    p1 = jnp.float32(-3.5233877e-06) + p1 * wc
    p1 = jnp.float32(-4.39150654e-06) + p1 * wc
    p1 = jnp.float32(0.00021858087) + p1 * wc
    p1 = jnp.float32(-0.00125372503) + p1 * wc
    p1 = jnp.float32(-0.00417768164) + p1 * wc
    p1 = jnp.float32(0.246640727) + p1 * wc
    p1 = jnp.float32(1.50140941) + p1 * wc

    # tail branch (w >= 5)
    wt = jnp.sqrt(w) - 3.0
    p2 = jnp.float32(-0.000200214257)
    p2 = jnp.float32(0.000100950558) + p2 * wt
    p2 = jnp.float32(0.00134934322) + p2 * wt
    p2 = jnp.float32(-0.00367342844) + p2 * wt
    p2 = jnp.float32(0.00573950773) + p2 * wt
    p2 = jnp.float32(-0.0076224613) + p2 * wt
    p2 = jnp.float32(0.00943887047) + p2 * wt
    p2 = jnp.float32(1.00167406) + p2 * wt
    p2 = jnp.float32(2.83297682) + p2 * wt

    return jnp.where(w < 5.0, p1, p2) * x


def randn_kernel(seed_ref, out_ref):
    # seed_ref: (1,) int32 in SMEM
    # out_ref : (1, 128) f32 in VMEM (lane-dense, single unmasked store)
    seed = seed_ref[0].astype(jnp.uint32)

    # Per-lane counter (>=2-D iota for TPU), decorrelated via golden-ratio step.
    idx = lax.broadcasted_iota(jnp.int32, (1, LANES), 1).astype(jnp.uint32)
    x = idx * jnp.uint32(0x9E3779B9) + seed
    bits = _mix(_mix(x) + jnp.uint32(0x9E3779B9))

    # Top 24 bits -> uniform in (0, 1), strictly open on both ends.
    hi = (bits >> jnp.uint32(8)).astype(jnp.int32).astype(jnp.float32)
    u = (hi + 0.5) * jnp.float32(1.0 / (1 << 24))

    # Standard normal via inverse CDF: sqrt(2) * erfinv(2u - 1).
    out_ref[...] = jnp.float32(1.4142135623730951) * _erfinv(2.0 * u - 1.0)


def pallas_randn(seed) -> jax.Array:
    seed_arr = jnp.asarray([seed], dtype=jnp.int32)
    out = pl.pallas_call(
        randn_kernel,
        out_shape=jax.ShapeDtypeStruct((1, LANES), jnp.float32),
        in_specs=[pl.BlockSpec(memory_space=pltpu.MemorySpace.SMEM)],
        out_specs=pl.BlockSpec(memory_space=pltpu.MemorySpace.VMEM),
    )(seed_arr)
    # Keep only the first 64 samples (host-side slice keeps the store lane-dense).
    return out[0, :N]


if __name__ == "__main__":
    key = jax.random.PRNGKey(0)
    # Deterministic example seed derived from the PRNG key.
    seed = int(jax.random.randint(key, (), 0, 2**31 - 1, dtype=jnp.int32))

    y = pallas_randn(seed)
    jax.block_until_ready(y)

    assert y.shape == (N,), y.shape
    assert y.dtype == jnp.float32, y.dtype
    assert bool(jnp.all(jnp.isfinite(y)))

    # Same seed -> same samples (determinism check).
    y2 = pallas_randn(seed)
    jax.block_until_ready(y2)
    assert bool(jnp.all(y == y2))

    # Different seed -> different stream.
    y3 = pallas_randn(seed ^ 12345)
    jax.block_until_ready(y3)
    assert not bool(jnp.all(y == y3))

    print("KERNEL_OK")
</pallas_src>

<mosaic_0001>
module attributes {stable_mosaic.version = 11 : i64} {
  func.func @randn_kernel(%arg0: memref<1xi32, #tpu.memory_space<smem>>, %arg1: memref<1x128xf32, #tpu.memory_space<vmem>>) attributes {dimension_semantics = [], scalar_prefetch = 0 : i64, scratch_operands = 0 : i64, tpu.core_type = #tpu.core_type<tc>} {
    %c0 = arith.constant 0 : index
    %0 = memref.load %arg0[%c0] : memref<1xi32, #tpu.memory_space<smem>>
    %1 = tpu.iota {dimensions = array<i32: 1>} : vector<1x128xi32>
    %c-1640531527_i32 = arith.constant -1640531527 : i32
    %2 = vector.broadcast %c-1640531527_i32 : i32 to vector<1x128xi32>
    %3 = arith.muli %1, %2 : vector<1x128xi32>
    %4 = vector.broadcast %0 : i32 to vector<1x128xi32>
    %5 = arith.addi %3, %4 : vector<1x128xi32>
    %c16_i32 = arith.constant 16 : i32
    %6 = vector.broadcast %c16_i32 : i32 to vector<1x128xi32>
    %7 = arith.shrui %5, %6 : vector<1x128xi32>
    %8 = arith.xori %5, %7 : vector<1x128xi32>
    %c-2048144789_i32 = arith.constant -2048144789 : i32
    %9 = vector.broadcast %c-2048144789_i32 : i32 to vector<1x128xi32>
    %10 = arith.muli %8, %9 : vector<1x128xi32>
    %c13_i32 = arith.constant 13 : i32
    %11 = vector.broadcast %c13_i32 : i32 to vector<1x128xi32>
    %12 = arith.shrui %10, %11 : vector<1x128xi32>
    %13 = arith.xori %10, %12 : vector<1x128xi32>
    %c-1028477387_i32 = arith.constant -1028477387 : i32
    %14 = vector.broadcast %c-1028477387_i32 : i32 to vector<1x128xi32>
    %15 = arith.muli %13, %14 : vector<1x128xi32>
    %c16_i32_0 = arith.constant 16 : i32
    %16 = vector.broadcast %c16_i32_0 : i32 to vector<1x128xi32>
    %17 = arith.shrui %15, %16 : vector<1x128xi32>
    %18 = arith.xori %15, %17 : vector<1x128xi32>
    %c-1640531527_i32_1 = arith.constant -1640531527 : i32
    %19 = vector.broadcast %c-1640531527_i32_1 : i32 to vector<1x128xi32>
    %20 = arith.addi %18, %19 : vector<1x128xi32>
    %c16_i32_2 = arith.constant 16 : i32
    %21 = vector.broadcast %c16_i32_2 : i32 to vector<1x128xi32>
    %22 = arith.shrui %20, %21 : vector<1x128xi32>
    %23 = arith.xori %20, %22 : vector<1x128xi32>
    %c-2048144789_i32_3 = arith.constant -2048144789 : i32
    %24 = vector.broadcast %c-2048144789_i32_3 : i32 to vector<1x128xi32>
    %25 = arith.muli %23, %24 : vector<1x128xi32>
    %c13_i32_4 = arith.constant 13 : i32
    %26 = vector.broadcast %c13_i32_4 : i32 to vector<1x128xi32>
    %27 = arith.shrui %25, %26 : vector<1x128xi32>
    %28 = arith.xori %25, %27 : vector<1x128xi32>
    %c-1028477387_i32_5 = arith.constant -1028477387 : i32
    %29 = vector.broadcast %c-1028477387_i32_5 : i32 to vector<1x128xi32>
    %30 = arith.muli %28, %29 : vector<1x128xi32>
    %c16_i32_6 = arith.constant 16 : i32
    %31 = vector.broadcast %c16_i32_6 : i32 to vector<1x128xi32>
    %32 = arith.shrui %30, %31 : vector<1x128xi32>
    %33 = arith.xori %30, %32 : vector<1x128xi32>
    %c8_i32 = arith.constant 8 : i32
    %34 = vector.broadcast %c8_i32 : i32 to vector<1x128xi32>
    %35 = arith.shrui %33, %34 : vector<1x128xi32>
    %36 = arith.sitofp %35 : vector<1x128xi32> to vector<1x128xf32>
    %cst = arith.constant 5.000000e-01 : f32
    %37 = vector.broadcast %cst : f32 to vector<1x128xf32>
    %38 = arith.addf %36, %37 : vector<1x128xf32>
    %cst_7 = arith.constant 5.96046448E-8 : f32
    %39 = vector.broadcast %cst_7 : f32 to vector<1x128xf32>
    %40 = arith.mulf %38, %39 : vector<1x128xf32>
    %cst_8 = arith.constant 2.000000e+00 : f32
    %41 = vector.broadcast %cst_8 : f32 to vector<1x128xf32>
    %42 = arith.mulf %41, %40 : vector<1x128xf32>
    %cst_9 = arith.constant 1.000000e+00 : f32
    %43 = vector.broadcast %cst_9 : f32 to vector<1x128xf32>
    %44 = arith.subf %42, %43 : vector<1x128xf32>
    %cst_10 = arith.constant 1.000000e+00 : f32
    %45 = vector.broadcast %cst_10 : f32 to vector<1x128xf32>
    %46 = arith.subf %45, %44 : vector<1x128xf32>
    %cst_11 = arith.constant 1.000000e+00 : f32
    %47 = vector.broadcast %cst_11 : f32 to vector<1x128xf32>
    %48 = arith.addf %47, %44 : vector<1x128xf32>
    %49 = arith.mulf %46, %48 : vector<1x128xf32>
    %50 = math.log %49 : vector<1x128xf32>
    %cst_12 = arith.constant 0.000000e+00 : f32
    %51 = vector.broadcast %cst_12 : f32 to vector<1x128xf32>
    %52 = arith.subf %51, %50 : vector<1x128xf32>
    %cst_13 = arith.constant 2.500000e+00 : f32
    %53 = vector.broadcast %cst_13 : f32 to vector<1x128xf32>
    %54 = arith.subf %52, %53 : vector<1x128xf32>
    %cst_14 = arith.constant 2.81022636E-8 : f32
    %55 = vector.broadcast %cst_14 : f32 to vector<1x128xf32>
    %56 = arith.mulf %55, %54 : vector<1x128xf32>
    %cst_15 = arith.constant 3.43273939E-7 : f32
    %57 = vector.broadcast %cst_15 : f32 to vector<1x128xf32>
    %58 = arith.addf %57, %56 : vector<1x128xf32>
    %59 = arith.mulf %58, %54 : vector<1x128xf32>
    %cst_16 = arith.constant -3.5233877E-6 : f32
    %60 = vector.broadcast %cst_16 : f32 to vector<1x128xf32>
    %61 = arith.addf %60, %59 : vector<1x128xf32>
    %62 = arith.mulf %61, %54 : vector<1x128xf32>
    %cst_17 = arith.constant -4.39150654E-6 : f32
    %63 = vector.broadcast %cst_17 : f32 to vector<1x128xf32>
    %64 = arith.addf %63, %62 : vector<1x128xf32>
    %65 = arith.mulf %64, %54 : vector<1x128xf32>
    %cst_18 = arith.constant 2.1858087E-4 : f32
    %66 = vector.broadcast %cst_18 : f32 to vector<1x128xf32>
    %67 = arith.addf %66, %65 : vector<1x128xf32>
    %68 = arith.mulf %67, %54 : vector<1x128xf32>
    %cst_19 = arith.constant -0.00125372503 : f32
    %69 = vector.broadcast %cst_19 : f32 to vector<1x128xf32>
    %70 = arith.addf %69, %68 : vector<1x128xf32>
    %71 = arith.mulf %70, %54 : vector<1x128xf32>
    %cst_20 = arith.constant -0.00417768164 : f32
    %72 = vector.broadcast %cst_20 : f32 to vector<1x128xf32>
    %73 = arith.addf %72, %71 : vector<1x128xf32>
    %74 = arith.mulf %73, %54 : vector<1x128xf32>
    %cst_21 = arith.constant 0.246640727 : f32
    %75 = vector.broadcast %cst_21 : f32 to vector<1x128xf32>
    %76 = arith.addf %75, %74 : vector<1x128xf32>
    %77 = arith.mulf %76, %54 : vector<1x128xf32>
    %cst_22 = arith.constant 1.50140941 : f32
    %78 = vector.broadcast %cst_22 : f32 to vector<1x128xf32>
    %79 = arith.addf %78, %77 : vector<1x128xf32>
    %80 = math.sqrt %52 : vector<1x128xf32>
    %cst_23 = arith.constant 3.000000e+00 : f32
    %81 = vector.broadcast %cst_23 : f32 to vector<1x128xf32>
    %82 = arith.subf %80, %81 : vector<1x128xf32>
    %cst_24 = arith.constant -2.00214257E-4 : f32
    %83 = vector.broadcast %cst_24 : f32 to vector<1x128xf32>
    %84 = arith.mulf %83, %82 : vector<1x128xf32>
    %cst_25 = arith.constant 1.00950558E-4 : f32
    %85 = vector.broadcast %cst_25 : f32 to vector<1x128xf32>
    %86 = arith.addf %85, %84 : vector<1x128xf32>
    %87 = arith.mulf %86, %82 : vector<1x128xf32>
    %cst_26 = arith.constant 0.00134934322 : f32
    %88 = vector.broadcast %cst_26 : f32 to vector<1x128xf32>
    %89 = arith.addf %88, %87 : vector<1x128xf32>
    %90 = arith.mulf %89, %82 : vector<1x128xf32>
    %cst_27 = arith.constant -0.00367342844 : f32
    %91 = vector.broadcast %cst_27 : f32 to vector<1x128xf32>
    %92 = arith.addf %91, %90 : vector<1x128xf32>
    %93 = arith.mulf %92, %82 : vector<1x128xf32>
    %cst_28 = arith.constant 0.00573950773 : f32
    %94 = vector.broadcast %cst_28 : f32 to vector<1x128xf32>
    %95 = arith.addf %94, %93 : vector<1x128xf32>
    %96 = arith.mulf %95, %82 : vector<1x128xf32>
    %cst_29 = arith.constant -0.0076224613 : f32
    %97 = vector.broadcast %cst_29 : f32 to vector<1x128xf32>
    %98 = arith.addf %97, %96 : vector<1x128xf32>
    %99 = arith.mulf %98, %82 : vector<1x128xf32>
    %cst_30 = arith.constant 0.00943887047 : f32
    %100 = vector.broadcast %cst_30 : f32 to vector<1x128xf32>
    %101 = arith.addf %100, %99 : vector<1x128xf32>
    %102 = arith.mulf %101, %82 : vector<1x128xf32>
    %cst_31 = arith.constant 1.00167406 : f32
    %103 = vector.broadcast %cst_31 : f32 to vector<1x128xf32>
    %104 = arith.addf %103, %102 : vector<1x128xf32>
    %105 = arith.mulf %104, %82 : vector<1x128xf32>
    %cst_32 = arith.constant 2.83297682 : f32
    %106 = vector.broadcast %cst_32 : f32 to vector<1x128xf32>
    %107 = arith.addf %106, %105 : vector<1x128xf32>
    %cst_33 = arith.constant 5.000000e+00 : f32
    %108 = vector.broadcast %cst_33 : f32 to vector<1x128xf32>
    %109 = arith.cmpf olt, %52, %108 : vector<1x128xf32>
    %110 = arith.select %109, %79, %107 : vector<1x128xi1>, vector<1x128xf32>
    %111 = arith.mulf %110, %44 : vector<1x128xf32>
    %cst_34 = arith.constant 1.41421354 : f32
    %112 = vector.broadcast %cst_34 : f32 to vector<1x128xf32>
    %113 = arith.mulf %112, %111 : vector<1x128xf32>
    %c0_35 = arith.constant 0 : index
    %c0_36 = arith.constant 0 : index
    %114 = vector.load %arg1[%c0_35, %c0_36] : memref<1x128xf32, #tpu.memory_space<vmem>>, vector<1x128xf32>
    tpu.vector_store %arg1[%c0_35, %c0_36], %113 {strides = array<i32>} : memref<1x128xf32, #tpu.memory_space<vmem>>, vector<1x128xf32>,
    return
  }
}

</mosaic_0001>

<bundles_post_ra>
// kernel: tpu_custom_call.1
= control target key start
LH: loop header
LB: loop body
LE: loop exit
PB: predicated region body
PF: predicated region fallthrough
CT: control target
= control target key end

     0   :  { %v11_v0 = vlaneseq  ;;  %s163_s0 = inlined_call_operand.<no memory space> [shape: s32[1], index: 0, kind: input, shape index: {}]   ;;  %s164_s1 = inlined_call_operand.hbm [shape: f32[1,128], index: 1, kind: output, shape index: {}]  }
   0x1   :  { %7 = vsyncpa [#allocation4], 0  ;;  %v14_v2 = vstv %s163_s0  ;;  %s137_s0 = smov [#allocation3]  }
   0x2   :  { %v12_v1 = vand.u32 127, %v11_v0  ;;  %s97_s8 = sshll.u32 %s137_s0, 4  ;;  %s98_s8 = int_to_ptr.vmem [resolvable:$true] %s97_s8 }
   0x3   :  { %s113_s9 = scalar_lea.vmem %s98_s8, 16  ;;  %s117_s10 = scalar_lea.vmem %s98_s8, 32 }
   0x4   :  { %v13_v3 = vmul.u32 2654435769, %v12_v1  ;;  %p114_p0 = scmp.ne.s32.totalorder %s98_s8, %s113_s9  ;;  %p118_p1 = scmp.lt.s32.totalorder %s98_s8, %s98_s8 }
   0x5   :  { %p119_p2 = scmp.lt.s32.totalorder %s117_s10, %s113_s9 }
   0x6   :  { %v15_v4 = vadd.s32 %v14_v2, %v13_v3 }
   0x7   :  { %p120_p3 = por %p119_p2, %p118_p1 }
   0x8   :  { %v16_v5 = vshrl.u32 %v15_v4, 16 }
   0x9   :  { %p121_p4 = pnand %p120_p3, %p114_p0 }
   0xa   :  { %v17_v6 = vxor.u32 %v16_v5, %v15_v4 }
   0xc   :  { %v18_v7 = vmul.u32 2246822507, %v17_v6 }
   0xe   :  { %v19_v8 = vshrl.u32 %v18_v7, 13 }
  0x10   :  { %v20_v9 = vxor.u32 %v19_v8, %v18_v7 }
  0x12   :  { %v21_v10 = vmul.u32 3266489909, %v20_v9 }
  0x14   :  { %v22_v11 = vshrl.u32 %v21_v10, 16 }
  0x16   :  { %v23_v12 = vxor.u32 %v22_v11, %v21_v10 }
  0x18   :  { %v24_v13 = vadd.s32 2654435769, %v23_v12 }
  0x1a   :  { %v25_v14 = vshrl.u32 %v24_v13, 16 }
  0x1c   :  { %v26_v15 = vxor.u32 %v25_v14, %v24_v13 }
  0x1e   :  { %v27_v16 = vmul.u32 2246822507, %v26_v15 }
  0x20   :  { %v28_v17 = vshrl.u32 %v27_v16, 13 }
  0x22   :  { %v29_v18 = vxor.u32 %v28_v17, %v27_v16 }
  0x24   :  { %v30_v19 = vmul.u32 3266489909, %v29_v18 }
  0x26   :  { %v31_v20 = vshrl.u32 %v30_v19, 16 }
  0x28   :  { %v32_v21 = vxor.u32 %v31_v20, %v30_v19 }
  0x2a   :  { %v33_v22 = vshrl.u32 %v32_v21, 8 }
  0x2c   :  { %v34_v23 = vcvt.s32.f32 %v33_v22 }
  0x2e   :  { %v35_v24 = vadd.f32 0.5, %v34_v23 }
  0x30   :  { %v36_v25 = vmul.f32 5.9604645e-08, %v35_v24 }
  0x32   :  { %v37_v26 = vmul.f32 2.0, %v36_v25 }
  0x34   :  { %v105_v27 = vadd.f32 -1.0, %v37_v26 }
  0x36   :  { %v39_v28 = vsub.f32 1.0, %v105_v27  ;;  %v40_v29 = vadd.f32 1.0, %v105_v27 }
  0x38   :  { %v41_v30 = vmul.f32 %v40_v29, %v39_v28 }
  0x3a   :  { %109 = vlog2.f32 %v41_v30 }
  0x44   :  { %v110_v31 = vpop.eup %109 }
  0x45   :  { %v43_v32 = vmul.f32 0.6931472, %v110_v31 }
  0x47   :  { %v44_v33 = vsub.f32 0.0, %v43_v32 }
  0x49   :  { %v106_v34 = vadd.f32 -2.5, %v44_v33  ;;  %111 = vrsqrt.f32 %v44_v33  ;;  %vm64_vm0 = vcmp.eq.f32.partialorder %v44_v33, inf  ;;  %v67_v41 = vand.u32 2147483648, %v44_v33 }
  0x4a   :  { %vm66_vm1 = vcmp.eq.f32.partialorder %v44_v33, 0.0  ;;  %vm86_vm2 = vcmp.lt.f32.partialorder %v44_v33, 5.0 }
  0x4b   :  { %v46_v35 = vmul.f32 2.8102264e-08, %v106_v34 }
  0x4d   :  { %v47_v36 = vadd.f32 3.4327394e-07, %v46_v35 }
  0x4f   :  { %v48_v37 = vmul.f32 %v106_v34, %v47_v36 }
  0x51   :  { %v49_v38 = vadd.f32 -3.5233877e-06, %v48_v37 }
  0x53   :  { %v112_v39 = vpop.eup %111  ;;  %v50_v40 = vmul.f32 %v106_v34, %v49_v38 }
  0x54   :  { %v63_v42 = vmul.f32 %v112_v39, %v44_v33 }
  0x55   :  { %v51_v43 = vadd.f32 -4.3915065e-06, %v50_v40 }
  0x56   :  { %v65_v44 = vsel %vm64_vm0, %v44_v33, %v63_v42 }
  0x57   :  { %v52_v45 = vmul.f32 %v106_v34, %v51_v43  ;;  %v68_v46 = vsel %vm66_vm1, %v67_v41, %v65_v44 }
  0x58   :  { %v107_v47 = vadd.f32 -3.0, %v68_v46 }
  0x59   :  { %v53_v48 = vadd.f32 0.00021858087, %v52_v45 }
  0x5a   :  { %v70_v49 = vmul.f32 -0.00020021426, %v107_v47 }
  0x5b   :  { %v54_v50 = vmul.f32 %v106_v34, %v53_v48 }
  0x5c   :  { %v71_v51 = vadd.f32 0.00010095056, %v70_v49 }
  0x5d   :  { %v55_v52 = vadd.f32 -0.001253725, %v54_v50 }
  0x5e   :  { %v72_v53 = vmul.f32 %v107_v47, %v71_v51 }
  0x5f   :  { %v56_v55 = vmul.f32 %v106_v34, %v55_v52 }
  0x60   :  { %v73_v54 = vadd.f32 0.0013493432, %v72_v53 }
  0x61   :  { %v57_v58 = vadd.f32 -0.0041776816, %v56_v55 }
  0x62   :  { %v74_v56 = vmul.f32 %v107_v47, %v73_v54 }
  0x63   :  { %v58_v61 = vmul.f32 %v106_v34, %v57_v58 }
  0x64   :  { %v75_v57 = vadd.f32 -0.0036734284, %v74_v56 }
  0x65   :  { %v59_v0 = vadd.f32 0.24664073, %v58_v61 }
  0x66   :  { %v76_v59 = vmul.f32 %v107_v47, %v75_v57 }
  0x67   :  { %v60_v3 = vmul.f32 %v106_v34, %v59_v0 }
  0x68   :  { %v77_v60 = vadd.f32 0.0057395077, %v76_v59 }
  0x69   :  { %v61_v6 = vadd.f32 1.5014094, %v60_v3 }
  0x6a   :  { %v78_v62 = vmul.f32 %v107_v47, %v77_v60 }
  0x6c   :  { %v79_v63 = vadd.f32 -0.0076224613, %v78_v62 }
  0x6e   :  { %v80_v1 = vmul.f32 %v107_v47, %v79_v63 }
  0x70   :  { %v81_v2 = vadd.f32 0.0094388705, %v80_v1 }
  0x72   :  { %v82_v4 = vmul.f32 %v107_v47, %v81_v2 }
  0x74   :  { %v83_v5 = vadd.f32 1.001674, %v82_v4 }
  0x76   :  { %v84_v7 = vmul.f32 %v107_v47, %v83_v5 }
  0x78   :  { %v85_v8 = vadd.f32 2.8329768, %v84_v7 }
  0x7a   :  { %v87_v9 = vsel %vm86_vm2, %v61_v6, %v85_v8 }
  0x7b   :  { %v88_v10 = vmul.f32 %v105_v27, %v87_v9 }
  0x7d   :  { %v89_v11 = vmul.f32 1.4142135, %v88_v10 }
  0x7f   :  { %90 = vst [vmem:[#allocation3] sm:$0x1] %v89_v11 }
  0x80   :  { %124 = shalt.err (!%p121_p4)
}
  0x81   :  { %s125_s13 = scalar_lea.hbm %s164_s1, 16 }
  0x82   :  { %p126_p5 = scmp.ne.s32.totalorder %s164_s1, %s125_s13  ;;  %p129_p6 = scmp.lt.u32.totalorder %s125_s13, %s164_s1 }
  0x84   :  { %p131_p7 = pnand %p129_p6, %p126_p5 }
  0x86   :  { %134 = shalt.err (!%p131_p7)
}
  0x87   :  { %100 = dma.vmem_to_hbm [thread:$0]  %s98_s8, 16, %s164_s1, [#allocation4]  }
  0x88   :  { %135 = dma.done.wait [#allocation4], 16  }
  0x89   :  { %136 = vsyncadd [#allocation4], 4294967280 }
  0x8a   :  { %104 = vsyncpa [#allocation4], 1 }

</bundles_post_ra>
